<compile_context>
chip_gen: v7x
topology: tpu7x:2x2x1
jax: 0.10.0
libtpu: 0.0.40
codegen_flags: <defaults>
</compile_context>

<pallas_src>
import functools

import jax
import jax.numpy as jnp
from jax.experimental import pallas as pl
from jax.experimental.pallas import tpu as pltpu

HIDDEN = 512
BN_EPS = 1e-5
LANE = 128


def _round_up(x, m):
    return (x + m - 1) // m * m


def _cdiv(a, b):
    return -(-a // b)


def _tpu_config():
    """Per-generation batch-tile cap and scoped-VMEM limit.

    v5e/v6e: 128 MiB physical VMEM -> bigger tiles amortize per-step pipeline
    overhead.  v7x (or unknown): 64 MiB physical -> stay at 1024 rows / 48 MiB.
    """
    try:
        vmem = getattr(pltpu.get_tpu_info(), "vmem_capacity_bytes", None)
    except Exception:
        vmem = None
    if vmem is not None and vmem >= 128 * 1024 * 1024:
        return 2048, 64 * 1024 * 1024
    return 1024, 48 * 1024 * 1024


MAX_TILE_N, VMEM_LIMIT = _tpu_config()


def _resident_spec(shape, index_map):
    """Constant-index (VMEM-resident) operand: request a single pipeline buffer
    instead of the default double buffer (halves its VMEM footprint)."""
    try:
        return pl.BlockSpec(shape, index_map, pipeline_mode=pl.Buffered(1))
    except TypeError:  # JAX version without pipeline_mode -> default buffering
        return pl.BlockSpec(shape, index_map)


# ---------------------------------------------------------------------------
# Fused kernel: phase 0 = BN batch statistics, phase 1 = apply.
# ---------------------------------------------------------------------------
def _fused_kernel(x_ref, w1_ref, gamma_ref, beta_ref, w2_ref, b2_ref, o_ref,
                  sum_ref, sumsq_ref, *, n_rows, tile_n):
    phase = pl.program_id(0)      # 0: statistics, 1: apply
    i = pl.program_id(1)          # batch tile

    # Shared by both phases: h = x @ W1 (bf16 MXU operands, f32 accumulation).
    h = jnp.dot(x_ref[...].astype(jnp.bfloat16), w1_ref[...],
                preferred_element_type=jnp.float32)

    @pl.when(phase == 0)
    def _stats():
        @pl.when(i == 0)
        def _():
            sum_ref[...] = jnp.zeros_like(sum_ref)
            sumsq_ref[...] = jnp.zeros_like(sumsq_ref)

        # Column sums on the MXU (f32 operands keep the statistics exact);
        # only the elementwise square stays on the VPU.  Zero-padded batch
        # rows have h == 0 (no b1), so they do not perturb the statistics.
        ones = jnp.ones((8, tile_n), jnp.float32)
        sum_ref[...] += jnp.dot(ones, h, preferred_element_type=jnp.float32)[0:1, :]
        sumsq_ref[...] += jnp.dot(ones, h * h,
                                  preferred_element_type=jnp.float32)[0:1, :]

        @pl.when(i == pl.num_programs(1) - 1)
        def _():
            # Fold batch stats + gamma/beta into a single (scale, shift) pair.
            # TODO(synk): switch to Welford/Chan-style per-tile centering if N
            # grows large enough for E[h^2]-mean^2 to cancel catastrophically.
            inv_n = jnp.float32(1.0 / n_rows)
            mean = sum_ref[...] * inv_n
            var = sumsq_ref[...] * inv_n - mean * mean      # biased variance
            scale = gamma_ref[...] * jax.lax.rsqrt(var + BN_EPS)
            sum_ref[...] = scale                            # scratch reuse: scale
            sumsq_ref[...] = beta_ref[...] - mean * scale   # scratch reuse: shift

    @pl.when(phase == 1)
    def _apply():
        a = jnp.maximum(h * sum_ref[...] + sumsq_ref[...], 0.0)   # fused BN+ReLU
        out = jnp.dot(a.astype(jnp.bfloat16), w2_ref[...],
                      preferred_element_type=jnp.float32) + b2_ref[...]
        o_ref[...] = jnp.tanh(out).astype(o_ref.dtype)


# ---------------------------------------------------------------------------
# One-time parameter preparation (hoisted out of the per-call forward).
# ---------------------------------------------------------------------------
def prepare_params(w1, b1, gamma, beta, w2, b2):
    """Lane-dense padding + bf16 cast of the weights; run exactly once.

    b1 is accepted for API fidelity but is exactly cancelled by the
    mean-centering of batch-statistics BatchNorm1d, so it is dropped.
    """
    del b1
    c, hidden = w1.shape
    d = w2.shape[1]
    cp = _round_up(c, LANE)
    dp = _round_up(d, LANE)
    w1_p = jnp.zeros((cp, hidden), jnp.bfloat16).at[:c, :].set(w1.astype(jnp.bfloat16))
    w2_p = jnp.zeros((hidden, dp), jnp.bfloat16).at[:, :d].set(w2.astype(jnp.bfloat16))
    b2_p = jnp.zeros((1, dp), jnp.float32).at[:, :d].set(
        b2.reshape(1, d).astype(jnp.float32))
    gamma_p = gamma.reshape(1, hidden).astype(jnp.float32)
    beta_p = beta.reshape(1, hidden).astype(jnp.float32)
    return w1_p, gamma_p, beta_p, w2_p, b2_p


# ---------------------------------------------------------------------------
# Forward
# ---------------------------------------------------------------------------
@functools.partial(jax.jit, static_argnames=("out_dim",))
def linear_norm_forward(x, w1_p, gamma_p, beta_p, w2_p, b2_p, *, out_dim):
    """LinearNorm forward with training-mode (batch-statistic) BatchNorm.

    Expects weights already padded/cast by prepare_params().
    """
    n, c = x.shape
    cp, hidden = w1_p.shape
    dp = w2_p.shape[1]

    # Balanced batch tiling: no up-to-2x over-padding (n=1025 -> 2 x 528 rows).
    n_tiles = _cdiv(n, MAX_TILE_N)
    tile_n = _round_up(_cdiv(n, n_tiles), 16)
    n_pad = _round_up(n, tile_n)
    n_tiles = n_pad // tile_n
    grid = (2, n_tiles)   # axis 0: phase (0=stats, 1=apply); axis 1: batch tile

    # Pad/cast x only when actually needed (shapes are static at trace time);
    # otherwise consume the f32 input directly and cast to bf16 in-kernel,
    # saving a full HBM read+write pass over x.
    if n_pad != n or cp != c:
        x_in = jnp.zeros((n_pad, cp), jnp.bfloat16).at[:n, :c].set(
            x.astype(jnp.bfloat16))
    else:
        x_in = x

    resident = lambda p, i: (0, 0)

    out_p = pl.pallas_call(
        functools.partial(_fused_kernel, n_rows=n, tile_n=tile_n),
        out_shape=jax.ShapeDtypeStruct((n_pad, dp), jnp.float32),
        grid=grid,
        in_specs=[
            pl.BlockSpec((tile_n, cp), lambda p, i: (i, 0)),
            _resident_spec((cp, hidden), resident),
            _resident_spec((1, hidden), resident),
            _resident_spec((1, hidden), resident),
            _resident_spec((hidden, dp), resident),
            _resident_spec((1, dp), resident),
        ],
        # Phase 0 never writes the output: map every phase-0 step to block 0 so
        # the (unwritten) buffer stays resident and only gets written back after
        # phase 1 fills it -> no wasted HBM writeback during the stats phase.
        out_specs=pl.BlockSpec((tile_n, dp), lambda p, i: (i * p, 0)),
        scratch_shapes=[pltpu.VMEM((1, hidden), jnp.float32),    # sum   -> scale
                        pltpu.VMEM((1, hidden), jnp.float32)],   # sumsq -> shift
        compiler_params=pltpu.CompilerParams(
            dimension_semantics=("arbitrary", "arbitrary"),
            vmem_limit_bytes=VMEM_LIMIT),
        cost_estimate=pl.CostEstimate(
            flops=2 * n_pad * hidden * (2 * cp + dp + 16),
            transcendentals=n_pad * dp,
            bytes_accessed=(2 * n_pad * cp * x_in.dtype.itemsize
                            + 2 * cp * hidden + 2 * hidden * dp
                            + 4 * (2 * hidden + dp) + 4 * n_pad * dp)),
    )(x_in, w1_p, gamma_p, beta_p, w2_p, b2_p)

    if n_pad == n and dp == out_dim:
        return out_p
    return out_p[:n, :out_dim]


def init_params(key, in_channels, dim):
    """Kaiming-style init mirroring weights_init_kaiming (non-trivial b1/gamma/
    beta so the reference check exercises the BN-cancels-b1 identity)."""
    k1, k2, k3, k4, k5, k6, kx = jax.random.split(key, 7)
    w1 = jax.random.normal(k1, (in_channels, HIDDEN), jnp.float32) * jnp.sqrt(2.0 / HIDDEN)
    b1 = 0.1 * jax.random.normal(k3, (HIDDEN,), jnp.float32)
    gamma = 1.0 + 0.02 * jax.random.normal(k4, (HIDDEN,), jnp.float32)
    beta = 0.05 * jax.random.normal(k5, (HIDDEN,), jnp.float32)
    w2 = jax.random.normal(k2, (HIDDEN, dim), jnp.float32) * jnp.sqrt(2.0 / dim)
    b2 = 0.1 * jax.random.normal(k6, (dim,), jnp.float32)
    return (w1, b1, gamma, beta, w2, b2), kx


if __name__ == "__main__":
    # Small config: cfg.MODEL.HEAD.IN_CHANNELS = 32, cfg.MODEL.HEAD.DIM = 64
    BATCH, IN_CHANNELS, DIM = 8, 32, 64

    key = jax.random.PRNGKey(0)
    (w1, b1, gamma, beta, w2, b2), kx = init_params(key, IN_CHANNELS, DIM)
    x = jax.random.normal(kx, (BATCH, IN_CHANNELS), jnp.float32)

    params = prepare_params(w1, b1, gamma, beta, w2, b2)   # one-time pad/cast
    out = linear_norm_forward(x, *params, out_dim=DIM)
    out = jax.block_until_ready(out)
    assert out.shape == (BATCH, DIM), out.shape

    # --- reference 1: exact module semantics, full f32, b1 included ----------
    h = x @ w1 + b1
    m = h.mean(axis=0, keepdims=True)
    v = ((h - m) ** 2).mean(axis=0, keepdims=True)          # biased variance
    h = (h - m) / jnp.sqrt(v + BN_EPS) * gamma + beta
    h = jnp.maximum(h, 0.0)
    ref_f32 = jnp.tanh(h @ w2 + b2)
    # Loose tolerance: kernel uses bf16 MXU operands and batch-of-8 BN amplifies
    # operand rounding; this check validates semantics (incl. b1 cancellation).
    assert jnp.allclose(out, ref_f32, atol=0.15, rtol=0.15), "mismatch vs f32 reference"

    # --- reference 2: numerically matched (bf16 operands, f32 accumulate) ----
    hb = jnp.dot(x.astype(jnp.bfloat16), w1.astype(jnp.bfloat16),
                 preferred_element_type=jnp.float32)
    m = hb.mean(axis=0, keepdims=True)
    v = ((hb - m) ** 2).mean(axis=0, keepdims=True)
    hb = (hb - m) * jax.lax.rsqrt(v + BN_EPS) * gamma + beta
    hb = jnp.maximum(hb, 0.0)
    ref_bf16 = jnp.tanh(
        jnp.dot(hb.astype(jnp.bfloat16), w2.astype(jnp.bfloat16),
                preferred_element_type=jnp.float32) + b2)
    assert jnp.allclose(out, ref_bf16, atol=1e-2, rtol=1e-2), "mismatch vs bf16-matched reference"

    print("KERNEL_OK")
</pallas_src>

<mosaic_0001>
module attributes {stable_mosaic.version = 11 : i64} {
  func.func @_fused_kernel(%arg0: i32, %arg1: i32, %arg2: memref<16x128xbf16, #tpu.memory_space<vmem>>, %arg3: memref<128x512xbf16, #tpu.memory_space<vmem>>, %arg4: memref<1x512xf32, #tpu.memory_space<vmem>>, %arg5: memref<1x512xf32, #tpu.memory_space<vmem>>, %arg6: memref<512x128xbf16, #tpu.memory_space<vmem>>, %arg7: memref<1x128xf32, #tpu.memory_space<vmem>>, %arg8: memref<16x128xf32, #tpu.memory_space<vmem>>, %arg9: memref<1x512xf32, #tpu.memory_space<vmem>>, %arg10: memref<1x512xf32, #tpu.memory_space<vmem>>) attributes {dimension_semantics = [#tpu.dimension_semantics<arbitrary>, #tpu.dimension_semantics<arbitrary>], iteration_bounds = array<i64: 2, 1>, scalar_prefetch = 0 : i64, scratch_operands = 2 : i64, tpu.core_type = #tpu.core_type<tc>, window_params = [{transform_indices = @transform_0, window_bounds = array<i64: 16, 128>}, {pipeline_mode = #tpu.pipeline_mode<synchronous>, transform_indices = @transform_1, window_bounds = array<i64: 128, 512>}, {pipeline_mode = #tpu.pipeline_mode<synchronous>, transform_indices = @transform_2, window_bounds = array<i64: 1, 512>}, {pipeline_mode = #tpu.pipeline_mode<synchronous>, transform_indices = @transform_3, window_bounds = array<i64: 1, 512>}, {pipeline_mode = #tpu.pipeline_mode<synchronous>, transform_indices = @transform_4, window_bounds = array<i64: 512, 128>}, {pipeline_mode = #tpu.pipeline_mode<synchronous>, transform_indices = @transform_5, window_bounds = array<i64: 1, 128>}, {transform_indices = @transform_6, window_bounds = array<i64: 16, 128>}]} {
    %c0 = arith.constant 0 : index
    %c0_0 = arith.constant 0 : index
    %0 = vector.load %arg2[%c0, %c0_0] : memref<16x128xbf16, #tpu.memory_space<vmem>>, vector<16x128xbf16>
    %c0_1 = arith.constant 0 : index
    %c0_2 = arith.constant 0 : index
    %1 = vector.load %arg3[%c0_1, %c0_2] : memref<128x512xbf16, #tpu.memory_space<vmem>>, vector<128x512xbf16>
    %cst = arith.constant dense<0.000000e+00> : vector<16x512xf32>
    %2 = tpu.matmul %0, %1, %cst {dimension_numbers = #tpu.dot_dimension_numbers<[1], [0], [0], [1], [0, 0, 1, 1], [], []>} : vector<16x128xbf16>, vector<128x512xbf16>, vector<16x512xf32> -> vector<16x512xf32>
    %c0_i32 = arith.constant 0 : i32
    %3 = arith.cmpi eq, %arg0, %c0_i32 : i32
    %4 = arith.extui %3 : i1 to i32
    %c0_i32_3 = arith.constant 0 : i32
    %5 = arith.cmpi ne, %4, %c0_i32_3 : i32
    scf.if %5 {
      %c0_i32_5 = arith.constant 0 : i32
      %9 = arith.cmpi eq, %arg1, %c0_i32_5 : i32
      %10 = arith.extui %9 : i1 to i32
      %c0_i32_6 = arith.constant 0 : i32
      %11 = arith.cmpi ne, %10, %c0_i32_6 : i32
      scf.if %11 {
        %cst_20 = arith.constant 0.000000e+00 : f32
        %27 = vector.broadcast %cst_20 : f32 to vector<1x512xf32>
        %c0_21 = arith.constant 0 : index
        %c0_22 = arith.constant 0 : index
        %28 = vector.load %arg9[%c0_21, %c0_22] : memref<1x512xf32, #tpu.memory_space<vmem>>, vector<1x512xf32>
        tpu.vector_store %arg9[%c0_21, %c0_22], %27 {strides = array<i32>} : memref<1x512xf32, #tpu.memory_space<vmem>>, vector<1x512xf32>,
        %cst_23 = arith.constant 0.000000e+00 : f32
        %29 = vector.broadcast %cst_23 : f32 to vector<1x512xf32>
        %c0_24 = arith.constant 0 : index
        %c0_25 = arith.constant 0 : index
        %30 = vector.load %arg10[%c0_24, %c0_25] : memref<1x512xf32, #tpu.memory_space<vmem>>, vector<1x512xf32>
        tpu.vector_store %arg10[%c0_24, %c0_25], %29 {strides = array<i32>} : memref<1x512xf32, #tpu.memory_space<vmem>>, vector<1x512xf32>,
      } else {
      }
      %cst_7 = arith.constant 1.000000e+00 : f32
      %12 = vector.broadcast %cst_7 : f32 to vector<8x16xf32>
      %c0_8 = arith.constant 0 : index
      %c0_9 = arith.constant 0 : index
      %13 = vector.load %arg9[%c0_8, %c0_9] : memref<1x512xf32, #tpu.memory_space<vmem>>, vector<1x512xf32>
      %cst_10 = arith.constant dense<0.000000e+00> : vector<8x512xf32>
      %14 = tpu.matmul %12, %2, %cst_10 {dimension_numbers = #tpu.dot_dimension_numbers<[1], [0], [0], [1], [0, 0, 1, 1], [], []>} : vector<8x16xf32>, vector<16x512xf32>, vector<8x512xf32> -> vector<8x512xf32>
      %15 = vector.extract_strided_slice %14 {offsets = [0, 0], sizes = [1, 512], strides = [1, 1]} : vector<8x512xf32> to vector<1x512xf32>
      %16 = arith.addf %13, %15 : vector<1x512xf32>
      %c0_11 = arith.constant 0 : index
      %c0_12 = arith.constant 0 : index
      %17 = vector.load %arg9[%c0_11, %c0_12] : memref<1x512xf32, #tpu.memory_space<vmem>>, vector<1x512xf32>
      tpu.vector_store %arg9[%c0_11, %c0_12], %16 {strides = array<i32>} : memref<1x512xf32, #tpu.memory_space<vmem>>, vector<1x512xf32>,
      %c0_13 = arith.constant 0 : index
      %c0_14 = arith.constant 0 : index
      %18 = vector.load %arg10[%c0_13, %c0_14] : memref<1x512xf32, #tpu.memory_space<vmem>>, vector<1x512xf32>
      %19 = arith.mulf %2, %2 : vector<16x512xf32>
      %cst_15 = arith.constant dense<0.000000e+00> : vector<8x512xf32>
      %20 = tpu.matmul %12, %19, %cst_15 {dimension_numbers = #tpu.dot_dimension_numbers<[1], [0], [0], [1], [0, 0, 1, 1], [], []>} : vector<8x16xf32>, vector<16x512xf32>, vector<8x512xf32> -> vector<8x512xf32>
      %21 = vector.extract_strided_slice %20 {offsets = [0, 0], sizes = [1, 512], strides = [1, 1]} : vector<8x512xf32> to vector<1x512xf32>
      %22 = arith.addf %18, %21 : vector<1x512xf32>
      %c0_16 = arith.constant 0 : index
      %c0_17 = arith.constant 0 : index
      %23 = vector.load %arg10[%c0_16, %c0_17] : memref<1x512xf32, #tpu.memory_space<vmem>>, vector<1x512xf32>
      tpu.vector_store %arg10[%c0_16, %c0_17], %22 {strides = array<i32>} : memref<1x512xf32, #tpu.memory_space<vmem>>, vector<1x512xf32>,
      %c0_i32_18 = arith.constant 0 : i32
      %24 = arith.cmpi eq, %arg1, %c0_i32_18 : i32
      %25 = arith.extui %24 : i1 to i32
      %c0_i32_19 = arith.constant 0 : i32
      %26 = arith.cmpi ne, %25, %c0_i32_19 : i32
      scf.if %26 {
        %c0_20 = arith.constant 0 : index
        %c0_21 = arith.constant 0 : index
        %27 = vector.load %arg9[%c0_20, %c0_21] : memref<1x512xf32, #tpu.memory_space<vmem>>, vector<1x512xf32>
        %cst_22 = arith.constant 1.250000e-01 : f32
        %28 = vector.broadcast %cst_22 : f32 to vector<1x512xf32>
        %29 = arith.mulf %27, %28 : vector<1x512xf32>
        %c0_23 = arith.constant 0 : index
        %c0_24 = arith.constant 0 : index
        %30 = vector.load %arg10[%c0_23, %c0_24] : memref<1x512xf32, #tpu.memory_space<vmem>>, vector<1x512xf32>
        %cst_25 = arith.constant 1.250000e-01 : f32
        %31 = vector.broadcast %cst_25 : f32 to vector<1x512xf32>
        %32 = arith.mulf %30, %31 : vector<1x512xf32>
        %33 = arith.mulf %29, %29 : vector<1x512xf32>
        %34 = arith.subf %32, %33 : vector<1x512xf32>
        %c0_26 = arith.constant 0 : index
        %c0_27 = arith.constant 0 : index
        %35 = vector.load %arg4[%c0_26, %c0_27] : memref<1x512xf32, #tpu.memory_space<vmem>>, vector<1x512xf32>
        %cst_28 = arith.constant 9.99999974E-6 : f32
        %36 = vector.broadcast %cst_28 : f32 to vector<1x512xf32>
        %37 = arith.addf %34, %36 : vector<1x512xf32>
        %38 = math.rsqrt %37 : vector<1x512xf32>
        %39 = arith.mulf %35, %38 : vector<1x512xf32>
        %c0_29 = arith.constant 0 : index
        %c0_30 = arith.constant 0 : index
        %40 = vector.load %arg9[%c0_29, %c0_30] : memref<1x512xf32, #tpu.memory_space<vmem>>, vector<1x512xf32>
        tpu.vector_store %arg9[%c0_29, %c0_30], %39 {strides = array<i32>} : memref<1x512xf32, #tpu.memory_space<vmem>>, vector<1x512xf32>,
        %c0_31 = arith.constant 0 : index
        %c0_32 = arith.constant 0 : index
        %41 = vector.load %arg5[%c0_31, %c0_32] : memref<1x512xf32, #tpu.memory_space<vmem>>, vector<1x512xf32>
        %42 = arith.mulf %29, %39 : vector<1x512xf32>
        %43 = arith.subf %41, %42 : vector<1x512xf32>
        %c0_33 = arith.constant 0 : index
        %c0_34 = arith.constant 0 : index
        %44 = vector.load %arg10[%c0_33, %c0_34] : memref<1x512xf32, #tpu.memory_space<vmem>>, vector<1x512xf32>
        tpu.vector_store %arg10[%c0_33, %c0_34], %43 {strides = array<i32>} : memref<1x512xf32, #tpu.memory_space<vmem>>, vector<1x512xf32>,
      } else {
      }
    } else {
    }
    %c1_i32 = arith.constant 1 : i32
    %6 = arith.cmpi eq, %arg0, %c1_i32 : i32
    %7 = arith.extui %6 : i1 to i32
    %c0_i32_4 = arith.constant 0 : i32
    %8 = arith.cmpi ne, %7, %c0_i32_4 : i32
    scf.if %8 {
      %c0_5 = arith.constant 0 : index
      %c0_6 = arith.constant 0 : index
      %9 = vector.load %arg9[%c0_5, %c0_6] : memref<1x512xf32, #tpu.memory_space<vmem>>, vector<1x512xf32>
      %10 = vector.broadcast %9 : vector<1x512xf32> to vector<16x512xf32>
      %11 = arith.mulf %2, %10 : vector<16x512xf32>
      %c0_7 = arith.constant 0 : index
      %c0_8 = arith.constant 0 : index
      %12 = vector.load %arg10[%c0_7, %c0_8] : memref<1x512xf32, #tpu.memory_space<vmem>>, vector<1x512xf32>
      %13 = vector.broadcast %12 : vector<1x512xf32> to vector<16x512xf32>
      %14 = arith.addf %11, %13 : vector<16x512xf32>
      %cst_9 = arith.constant 0.000000e+00 : f32
      %15 = vector.broadcast %cst_9 : f32 to vector<16x512xf32>
      %16 = arith.maximumf %14, %15 : vector<16x512xf32>
      %17 = arith.truncf %16 : vector<16x512xf32> to vector<16x512xbf16>
      %c0_10 = arith.constant 0 : index
      %c0_11 = arith.constant 0 : index
      %18 = vector.load %arg6[%c0_10, %c0_11] : memref<512x128xbf16, #tpu.memory_space<vmem>>, vector<512x128xbf16>
      %cst_12 = arith.constant dense<0.000000e+00> : vector<16x128xf32>
      %19 = tpu.matmul %17, %18, %cst_12 {dimension_numbers = #tpu.dot_dimension_numbers<[1], [0], [0], [1], [0, 0, 1, 1], [], []>} : vector<16x512xbf16>, vector<512x128xbf16>, vector<16x128xf32> -> vector<16x128xf32>
      %c0_13 = arith.constant 0 : index
      %c0_14 = arith.constant 0 : index
      %20 = vector.load %arg7[%c0_13, %c0_14] : memref<1x128xf32, #tpu.memory_space<vmem>>, vector<1x128xf32>
      %21 = vector.broadcast %20 : vector<1x128xf32> to vector<16x128xf32>
      %22 = arith.addf %19, %21 : vector<16x128xf32>
      %23 = math.tanh %22 : vector<16x128xf32>
      %c0_15 = arith.constant 0 : index
      %c0_16 = arith.constant 0 : index
      %24 = vector.load %arg8[%c0_15, %c0_16] : memref<16x128xf32, #tpu.memory_space<vmem>>, vector<16x128xf32>
      tpu.vector_store %arg8[%c0_15, %c0_16], %23 {strides = array<i32>} : memref<16x128xf32, #tpu.memory_space<vmem>>, vector<16x128xf32>,
    } else {
    }
    return
  }
  func.func @transform_0(%arg0: i32, %arg1: i32) -> (i32, i32) {
    %c0_i32 = arith.constant 0 : i32
    %c0_i32_0 = arith.constant 0 : i32
    return %arg1, %c0_i32 : i32, i32
  }
  func.func @transform_1(%arg0: i32, %arg1: i32) -> (i32, i32) {
    %c0_i32 = arith.constant 0 : i32
    %c0_i32_0 = arith.constant 0 : i32
    %c0_i32_1 = arith.constant 0 : i32
    return %c0_i32, %c0_i32_0 : i32, i32
  }
  func.func @transform_2(%arg0: i32, %arg1: i32) -> (i32, i32) {
    %c0_i32 = arith.constant 0 : i32
    %c0_i32_0 = arith.constant 0 : i32
    %c0_i32_1 = arith.constant 0 : i32
    return %c0_i32, %c0_i32_0 : i32, i32
  }
  func.func @transform_3(%arg0: i32, %arg1: i32) -> (i32, i32) {
    %c0_i32 = arith.constant 0 : i32
    %c0_i32_0 = arith.constant 0 : i32
    %c0_i32_1 = arith.constant 0 : i32
    return %c0_i32, %c0_i32_0 : i32, i32
  }
  func.func @transform_4(%arg0: i32, %arg1: i32) -> (i32, i32) {
    %c0_i32 = arith.constant 0 : i32
    %c0_i32_0 = arith.constant 0 : i32
    %c0_i32_1 = arith.constant 0 : i32
    return %c0_i32, %c0_i32_0 : i32, i32
  }
  func.func @transform_5(%arg0: i32, %arg1: i32) -> (i32, i32) {
    %c0_i32 = arith.constant 0 : i32
    %c0_i32_0 = arith.constant 0 : i32
    %c0_i32_1 = arith.constant 0 : i32
    return %c0_i32, %c0_i32_0 : i32, i32
  }
  func.func @transform_6(%arg0: i32, %arg1: i32) -> (i32, i32) {
    %0 = arith.muli %arg1, %arg0 : i32
    %c0_i32 = arith.constant 0 : i32
    %c0_i32_0 = arith.constant 0 : i32
    return %0, %c0_i32 : i32, i32
  }
}

</mosaic_0001>

<bundles_post_ra>
// kernel: linear_norm_forward.1
= control target key start
LH: loop header
LB: loop body
LE: loop exit
PB: predicated region body
PF: predicated region fallthrough
CT: control target
= control target key end

     0   :  { %11 = vsyncpa [#allocation5], 0  ;;  %s2114_s0 = inlined_call_operand.vmem [shape: bf16[16,128], index: 0, kind: input, shape index: {}]   ;;  %s2115_s1 = inlined_call_operand.hbm [shape: bf16[128,512], index: 1, kind: input, shape index: {}]   ;;  %s2116_s2 = inlined_call_operand.vmem [shape: f32[1,512], index: 2, kind: input, shape index: {}]   ;;  %s2117_s3 = inlined_call_operand.vmem [shape: f32[1,512], index: 3, kind: input, shape index: {}]   ;;  %s2118_s4 = inlined_call_operand.hbm [shape: bf16[512,128], index: 4, kind: input, shape index: {}]   ;;  %s2119_s5 = inlined_call_operand.vmem [shape: f32[1,128], index: 5, kind: input, shape index: {}]   ;;  %s2120_s6 = inlined_call_operand.vmem [shape: f32[16,128], index: 6, kind: output, shape index: {}]  }
   0x1   :  { %12 = vsyncpa [#allocation7], 0  ;;  %s1921_s21 = smov 0   ;;  %s1923_s22 = smov 0  }
   0x2   :  { %s1925_s23 = smov 0  }
   0x3 LB: > { %s1503_s24 = sadd.s32 4294967295, %s1874_s23   ;;  %s30_s25 = sadd.s32 1, %s1870_s22  ;;  %s1874_s23 = sphi %s1925_s23, %s18_s23   ;;  %s1870_s22 = sphi %s1923_s22, %s2132_s22   ;;  %s1866_s21 = sphi %s1921_s21, %s2131_s21  }
   0x4   : > { %p32_p0 = scmp.ge.s32.totalorder %s30_s25, 2  ;;  %p1505_p1 = scmp.ge.s32.totalorder %s1874_s23, 1 }
   0x5   : > { %p194_p2 = scmp.lt.s32.totalorder %s1874_s23, 3  ;;  %p1946_p4 = scmp.eq.s32.totalorder %s1503_s24, 0 }
   0x6   : > { %s2134_s25 = smov (%p32_p0, %s30_s25), 0  ;;  %s1876_s28 = smov [#allocation4]  }
   0x7   : > { %p1942_p3 = pnand %p1505_p1, %p194_p2  ;;  %s215_s29 = sshll.u32 %s1876_s28, 4  ;;  %s216_s29 = int_to_ptr.vmem [resolvable:$true] %s215_s29 }
   0x8   : > { %s2125_s27 = scalar_select %p1946_p4, 1, 0 }
   0x9   : > { %s2124_s26 = scalar_select %p1942_p3, 1, 0 }
   0xa   : > { %p1656_p5 = pneg %p1942_p3  ;;  %s1877_s7 = smov [#allocation6]  }
   0xb   : > { %s234_s8 = sshll.u32 %s1877_s7, 4  ;;  %s1788_s11 = scalar_lea.hbm %s2115_s1, 4096  ;;  %s1958_s8 = int_to_ptr.vmem [resolvable:$true] %s234_s8 }
   0xc   : > { %p1954_p6 = pnand %p1946_p4, %p1656_p5  ;;  %p1789_p7 = scmp.ne.s32.totalorder %s2115_s1, %s1788_s11 }
   0xd   : > { %p1795_p11 = scmp.lt.u32.totalorder %s1788_s11, %s2115_s1 }
   0xe   : > { %p1790_p8 = pneg %p1954_p6 }
  0x10   : > { %p1791_p9 = pnand %p1790_p8, %p1789_p7 }
  0x12   : > { %p1792_p10 = pneg %p1791_p9 }
  0x14   : > { %p1797_p12 = pnand %p1795_p11, %p1792_p10 }
  0x16   : > { %1800 = shalt.err (!%p1797_p12)
}
  0x17   : > { %s1801_s16 = scalar_lea.vmem %s216_s29, 4096  ;;  %p1809_p2 = scmp.lt.s32.totalorder %s216_s29, %s216_s29 }
  0x18   : > { %p1802_p13 = scmp.ne.s32.totalorder %s216_s29, %s1801_s16  ;;  %p1810_p5 = scmp.lt.s32.totalorder %s1801_s16, %s1801_s16 }
  0x1a   : > { %p1804_p0 = pnand %p1802_p13, %p1790_p8  ;;  %p1811_p4 = por %p1810_p5, %p1809_p2 }
  0x1c   : > { %p1805_p1 = pneg %p1804_p0 }
  0x1e   : > { %p1812_p3 = pnand %p1811_p4, %p1805_p1 }
  0x20   : > { %1815 = shalt.err (!%p1812_p3)
}
  0x21   : > { %s1878_s17 = smov 256   ;;  %s1879_s18 = smov 16  }
  0x22   : > { %1659 = dma.hbm_to_vmem [thread:$0]  (!%p1954_p6), %s2115_s1, 4096, %s216_s29, [#allocation5], %s1878_s17, %s1878_s17, %s1879_s18  }
  0x23   : > { %s1816_s7 = scalar_lea.hbm %s2118_s4, 4096 }
  0x24   : > { %p1817_p7 = scmp.ne.s32.totalorder %s2118_s4, %s1816_s7  ;;  %p1823_p9 = scmp.lt.u32.totalorder %s1816_s7, %s2118_s4 }
  0x26   : > { %p1819_p3 = pnand %p1817_p7, %p1790_p8 }
  0x28   : > { %p1820_p4 = pneg %p1819_p3 }
  0x2a   : > { %p1825_p10 = pnand %p1823_p9, %p1820_p4 }
  0x2c   : > { %1828 = shalt.err (!%p1825_p10)
}
  0x2d   : > { %s1829_s29 = scalar_lea.vmem %s1958_s8, 4096  ;;  %p1837_p0 = scmp.lt.s32.totalorder %s1958_s8, %s1958_s8 }
  0x2e   : > { %p1830_p11 = scmp.ne.s32.totalorder %s1958_s8, %s1829_s29  ;;  %p1838_p1 = scmp.lt.s32.totalorder %s1829_s29, %s1829_s29 }
  0x30   : > { %p1832_p12 = pnand %p1830_p11, %p1790_p8  ;;  %p1839_p2 = por %p1838_p1, %p1837_p0 }
  0x32   : > { %p1833_p13 = pneg %p1832_p12 }
  0x34   : > { %p1840_p5 = pnand %p1839_p2, %p1833_p13 }
  0x36   : > { %1843 = shalt.err (!%p1840_p5)
}
  0x37   : > { %s1880_s13 = smov 64   ;;  %s1881_s14 = smov 4  }
  0x38   : > { %1662 = dma.hbm_to_vmem [thread:$0]  (!%p1954_p6), %s2118_s4, 4096, %s1958_s8, [#allocation7], %s1880_s13, %s1880_s13, %s1881_s14  }
  0x39   : > { %p2127_p7 = scmp.ne.s32.totalorder %s2124_s26, 0 }
  0x3a   : > { %p2128_p8 = scmp.ne.s32.totalorder (!%p2127_p7), %s2125_s27, 0 }
  0x3b   : > { %253 = sbr.rel (%p2127_p7) target bundleno = 851 (0x353), region = 44 }
  0x42   : > { %1857 = dma.done.wait (%p2128_p8), [#allocation5], 4096  }
  0x43   : > { %1859 = vsyncadd (%p2128_p8), [#allocation5], 4294963200 }
  0x44   : > { %1861 = dma.done.wait (%p2128_p8), [#allocation7], 4096  }
  0x45   : > { %1863 = vsyncadd (%p2128_p8), [#allocation7], 4294963200  ;;  %v1882_v0 = vmov 0   ;;  %v1701_v1 = vld [vmem:[#allocation4 + $0x4] ss:$16 sps:$4 sm:$0xff]   ;;  %v1749_v33 = vld [vmem:[%s2114_s0] sm:$0xff]  }
  0x46   : > { %535 = vmatprep.mubr.bf16.mxu0 %v1882_v0  ;;  %578 = vmatprep.mubr.bf16.mxu1 %v1882_v0  ;;  %v1703_v2 = vld [vmem:[#allocation4 + $0xc] ss:$16 sps:$4 sm:$0xff]   ;;  %v1705_v3 = vld [vmem:[#allocation4] ss:$16 sps:$4 sm:$0xff]   ;;  %v1706_v4 = vld [vmem:[#allocation4 + $0x8] ss:$16 sps:$4 sm:$0xff]  }
  0x47   : > { %503 = vmatprep.subr.bf16.mxu0 %v1701_v1  ;;  %546 = vmatprep.subr.bf16.mxu1 %v1703_v2  ;;  %v1707_v5 = vld [vmem:[#allocation4 + $0x24] ss:$16 sps:$4 sm:$0xff]   ;;  %v1709_v6 = vld [vmem:[#allocation4 + $0x2c] ss:$16 sps:$4 sm:$0xff]   ;;  %v1711_v7 = vld [vmem:[#allocation4 + $0x20] ss:$16 sps:$4 sm:$0xff]  }
  0x48   : > { %504 = vmatpush1.bf16.msra.mxu0 %v1705_v3  ;;  %547 = vmatpush1.bf16.msra.mxu1 %v1706_v4  ;;  %v1712_v8 = vld [vmem:[#allocation4 + $0x28] ss:$16 sps:$4 sm:$0xff]   ;;  %v1713_v9 = vld [vmem:[#allocation4 + $0x44] ss:$16 sps:$4 sm:$0xff]   ;;  %v1715_v10 = vld [vmem:[#allocation4 + $0x4c] ss:$16 sps:$4 sm:$0xff]  }
  0x49   : > { %505 = vmatprep.subr.bf16.mxu0 %v1707_v5  ;;  %548 = vmatprep.subr.bf16.mxu1 %v1709_v6  ;;  %v1717_v11 = vld [vmem:[#allocation4 + $0x40] ss:$16 sps:$4 sm:$0xff]   ;;  %v1718_v12 = vld [vmem:[#allocation4 + $0x48] ss:$16 sps:$4 sm:$0xff]   ;;  %v1719_v13 = vld [vmem:[#allocation4 + $0x64] ss:$16 sps:$4 sm:$0xff]  }
  0x4a   : > { %v1721_v14 = vld [vmem:[#allocation4 + $0x6c] ss:$16 sps:$4 sm:$0xff]   ;;  %v1723_v15 = vld [vmem:[#allocation4 + $0x60] ss:$16 sps:$4 sm:$0xff]   ;;  %v1724_v16 = vld [vmem:[#allocation4 + $0x68] ss:$16 sps:$4 sm:$0xff]  }
  0x4b   : > { %v1725_v17 = vld [vmem:[#allocation4 + $0x84] ss:$16 sps:$4 sm:$0xff]   ;;  %v1727_v18 = vld [vmem:[#allocation4 + $0x8c] ss:$16 sps:$4 sm:$0xff]   ;;  %v1729_v19 = vld [vmem:[#allocation4 + $0x80] ss:$16 sps:$4 sm:$0xff]  }
  0x4c   : > { %506 = vmatpush1.bf16.msra.mxu0 %v1711_v7  ;;  %549 = vmatpush1.bf16.msra.mxu1 %v1712_v8  ;;  %v1730_v20 = vld [vmem:[#allocation4 + $0x88] ss:$16 sps:$4 sm:$0xff]   ;;  %v1731_v21 = vld [vmem:[#allocation4 + $0xa4] ss:$16 sps:$4 sm:$0xff]   ;;  %v1733_v22 = vld [vmem:[#allocation4 + $0xac] ss:$16 sps:$4 sm:$0xff]  }
  0x4d   : > { %507 = vmatprep.subr.bf16.mxu0 %v1713_v9  ;;  %550 = vmatprep.subr.bf16.mxu1 %v1715_v10  ;;  %v1735_v23 = vld [vmem:[#allocation4 + $0xa0] ss:$16 sps:$4 sm:$0xff]   ;;  %v1736_v24 = vld [vmem:[#allocation4 + $0xa8] ss:$16 sps:$4 sm:$0xff]   ;;  %v1737_v25 = vld [vmem:[#allocation4 + $0xc4] ss:$16 sps:$4 sm:$0xff]  }
  0x4e   : > { %v1739_v26 = vld [vmem:[#allocation4 + $0xcc] ss:$16 sps:$4 sm:$0xff]   ;;  %v1741_v27 = vld [vmem:[#allocation4 + $0xc0] ss:$16 sps:$4 sm:$0xff]   ;;  %v1742_v28 = vld [vmem:[#allocation4 + $0xc8] ss:$16 sps:$4 sm:$0xff]  }
  0x4f   : > { %v1743_v29 = vld [vmem:[#allocation4 + $0xe4] ss:$16 sps:$4 sm:$0xff]   ;;  %v1745_v30 = vld [vmem:[#allocation4 + $0xec] ss:$16 sps:$4 sm:$0xff]   ;;  %v1747_v31 = vld [vmem:[#allocation4 + $0xe0] ss:$16 sps:$4 sm:$0xff]  }
  0x50   : > { %508 = vmatpush1.bf16.msra.mxu0 %v1717_v11  ;;  %551 = vmatpush1.bf16.msra.mxu1 %v1718_v12  ;;  %v1748_v32 = vld [vmem:[#allocation4 + $0xe8] ss:$16 sps:$4 sm:$0xff]   ;;  %p1545_p6 = scmp.ne.s32.totalorder %s1866_s21, 0 }
  0x51   : > { %509 = vmatprep.subr.bf16.mxu0 %v1719_v13  ;;  %552 = vmatprep.subr.bf16.mxu1 %v1721_v14  ;;  %v597_v46 = vlaneseq (!%p1545_p6)  ;;  %vm604_vm0 = vcmask (!%p1545_p6), 130048   ;;  %v1883_v54 = vmov (!%p1545_p6), 0.0   ;;  %v1884_v60 = vmov (!%p1545_p6), 1.0  }
  0x52   : > { %v1885_v62 = vmov (!%p1545_p6), 1966171168  }
  0x53   : > { %vm2051_vm1 = vcmp.lt.s32.totalorder (!%p1545_p6), %v597_v46, 512  ;;  %v757_v63 = vunpack.c.l.s4 (!%p1545_p6), %v1885_v62  ;;  %v760_v1 = vshrl.u32 (!%p1545_p6), %v597_v46, 7 }
  0x54   : > { %510 = vmatpush1.bf16.msra.mxu0 %v1723_v15  ;;  %553 = vmatpush1.bf16.msra.mxu1 %v1724_v16  ;;  %601 = vst.msk [vmem:[#allocation2] sm:$0xf] (!%p1545_p6), %vm2051_vm1, %v1883_v54  ;;  %602 = vst.msk [vmem:[#allocation3] sm:$0xf] (!%p1545_p6), %vm2051_vm1, %v1883_v54 }
  0x55   : > { %511 = vmatprep.subr.bf16.mxu0 %v1725_v17  ;;  %554 = vmatprep.subr.bf16.mxu1 %v1727_v18  ;;  %v758_v0 = vunpack.c.0.s8 (!%p1545_p6), %v757_v63 }
  0x57   : > { %v761_v4 = vsub.s32 (!%p1545_p6), %v758_v0, %v760_v1 }
  0x58   : > { %512 = vmatpush1.bf16.msra.mxu0 %v1729_v19  ;;  %555 = vmatpush1.bf16.msra.mxu1 %v1730_v20 }
  0x59   : > { %513 = vmatprep.subr.bf16.mxu0 %v1731_v21  ;;  %556 = vmatprep.subr.bf16.mxu1 %v1733_v22 }
  0x5b   : > { %v603_v16 = vld [vmem:[#allocation2] sm:$0xf] (!%p1545_p6) }
  0x5c   : > { %514 = vmatpush1.bf16.msra.mxu0 %v1735_v23  ;;  %557 = vmatpush1.bf16.msra.mxu1 %v1736_v24  ;;  %v785_v24 = vld [vmem:[#allocation3] sm:$0xf] (!%p1545_p6) }
  0x5d   : > { %515 = vmatprep.subr.bf16.mxu0 %v1737_v25  ;;  %558 = vmatprep.subr.bf16.mxu1 %v1739_v26 }
  0x60   : > { %516 = vmatpush1.bf16.msra.mxu0 %v1741_v27  ;;  %559 = vmatpush1.bf16.msra.mxu1 %v1742_v28 }
  0x61   : > { %517 = vmatprep.subr.bf16.mxu0 %v1743_v29  ;;  %560 = vmatprep.subr.bf16.mxu1 %v1745_v30 }
  0x64   : > { %518 = vmatpush1.bf16.msra.mxu0 %v1747_v31  ;;  %561 = vmatpush1.bf16.msra.mxu1 %v1748_v32 }
  0x67   : > { %536 = vmatmul.mubr.bf16.vlgmr.msra.gmra.mrb[0].mxu0 %v1749_v33  ;;  %579 = vmatmul.mubr.bf16.vlgmr.msra.gmra.mrb[0].mxu1 %v1749_v33 }
  0x68   : > { %672 = vmatprep.mubr.f32.mxu0 (!%p1545_p6), %v1883_v54  ;;  %743 = vmatprep.mubr.f32.mxu1 (!%p1545_p6), %v1883_v54 }
 0x137   : > { %592 = sbr.rel (%p1545_p6) target bundleno = 583 (0x247), region = 56 }
 0x13a   : > { %v2020_v34 = vpop.f32.mrb[0].mxu0  ;;  %v2022_v35 = vpop.f32.mrb[0].mxu1 }
 0x13b   : > { %v2024_v36 = vpop.f32.mrb[1].mxu0  ;;  %v2026_v37 = vpop.f32.mrb[1].mxu1  ;;  %v786_v52 = vmul.f32 (!%p1545_p6), %v2020_v34, %v2020_v34  ;;  %v788_v56 = vmul.f32 (!%p1545_p6), %v2022_v35, %v2022_v35 }
 0x13c   : > { %v2028_v38 = vpop.f32.mrb[2].mxu0  ;;  %v2030_v39 = vpop.f32.mrb[2].mxu1  ;;  %v787_v47 = vmul.f32 (!%p1545_p6), %v2024_v36, %v2024_v36  ;;  %v789_v49 = vmul.f32 (!%p1545_p6), %v2026_v37, %v2026_v37 }
 0x13d   : > { %v2032_v40 = vpop.f32.mrb[3].mxu0  ;;  %v2034_v41 = vpop.f32.mrb[3].mxu1  ;;  %v1634_v44 = vpack.c.bf16 (!%p1545_p6), %v2028_v38, %v2020_v34  ;;  %v1638_v45 = vpack.c.bf16 (!%p1545_p6), %v2030_v39, %v2022_v35  ;;  %v790_v53 = vmul.f32 (!%p1545_p6), %v2028_v38, %v2028_v38  ;;  %v792_v57 = vmul.f32 (!%p1545_p6), %v2030_v39, %v2030_v39 }
 0x13e   : > { %v1632_v42 = vpack.c.bf16 %v2032_v40, %v2024_v36  ;;  %v1636_v43 = vpack.c.bf16 %v2034_v41, %v2026_v37  ;;  %v791_v48 = vmul.f32 %v2032_v40, %v2032_v40  ;;  %v793_v51 = vmul.f32 %v2034_v41, %v2034_v41 }
 0x13f   : > { %v1642_v59 = vpack.c.bf16 %v790_v53, %v786_v52  ;;  %v1646_v61 = vpack.c.bf16 %v792_v57, %v788_v56 }
 0x140   : > { %1633 = vmatprep.subr.bf16.mxu0 %v1632_v42  ;;  %1637 = vmatprep.subr.bf16.mxu1 %v1636_v43  ;;  %v1640_v55 = vpack.c.bf16 %v791_v48, %v787_v47  ;;  %v1644_v58 = vpack.c.bf16 %v793_v51, %v789_v49  ;;  %v976_v42 = vld [vmem:[%s2116_s2] sm:$0xf] }
 0x141   : > { %1635 = vmatpush1.bf16.msra.mxu0 %v1634_v44  ;;  %1639 = vmatpush1.bf16.msra.mxu1 %v1638_v45  ;;  %v981_v45 = vld [vmem:[%s2117_s3] sm:$0xf] }
 0x142   : > { %1641 = vmatprep.subr.bf16.mxu0 %v1640_v55  ;;  %1645 = vmatprep.subr.bf16.mxu1 %v1644_v58 }
 0x144   : > { %1546 = vmatmul.mubr.msk.f32.vlgmr.msra.gmra.mrb[0].mxu0 %vm604_vm0, %v1884_v60  ;;  %1547 = vmatmul.mubr.msk.f32.vlgmr.msra.gmra.mrb[0].mxu1 %vm604_vm0, %v1884_v60 }
 0x145   : > { %1643 = vmatpush1.bf16.msra.mxu0 %v1642_v59  ;;  %1647 = vmatpush1.bf16.msra.mxu1 %v1646_v61 }
 0x146   : > { %858 = vmatprep.mubr.f32.mxu0 %v1883_v54  ;;  %929 = vmatprep.mubr.f32.mxu1 %v1883_v54 }
 0x148   : > { %1548 = vmatmul.mubr.msk.f32.vlgmr.msra.gmra.mrb[2].mxu0 %vm604_vm0, %v1884_v60  ;;  %1549 = vmatmul.mubr.msk.f32.vlgmr.msra.gmra.mrb[2].mxu1 %vm604_vm0, %v1884_v60 }
 0x217   : > { %v674_v2 = vpop.f32.mrb[0].mxu0  ;;  %v745_v3 = vpop.f32.mrb[0].mxu1 }
 0x218   : > { %v676_v5 = vpop.f32.mrb[1].mxu0  ;;  %v747_v6 = vpop.f32.mrb[1].mxu1 }
 0x219   : > { %v754_v7 = vcombine.low %v674_v2, %v676_v5  ;;  %v755_v8 = vcombine.low %v745_v3, %v747_v6 }
 0x21b   : > { %v762_v9 = vrot.slane %v754_v7, %v761_v4  ;;  %v769_v10 = vrot.slane %v755_v8, %v761_v4  ;;  %v860_v11 = vpop.f32.mrb[2].mxu0  ;;  %v931_v12 = vpop.f32.mrb[2].mxu1 }
 0x21c   : > { %v862_v14 = vpop.f32.mrb[3].mxu0  ;;  %v933_v15 = vpop.f32.mrb[3].mxu1 }
 0x21d   : > { %v770_v13 = vcombine.low %v762_v9, %v769_v10  ;;  %v940_v17 = vcombine.low %v860_v11, %v862_v14  ;;  %v941_v18 = vcombine.low %v931_v12, %v933_v15 }
 0x21f   : > { %v777_v19 = vrot.slane %v770_v13, %v761_v4  ;;  %v948_v20 = vrot.slane %v940_v17, %v761_v4  ;;  %v955_v21 = vrot.slane %v941_v18, %v761_v4 }
 0x221   : > { %v779_v22 = vadd.f32 %v777_v19, %v603_v16  ;;  %v956_v23 = vcombine.low %v948_v20, %v955_v21 }
 0x223   : > { %784 = vst.msk [vmem:[#allocation2] sm:$0xf] %vm2051_vm1, %v779_v22  ;;  %v963_v25 = vrot.slane %v956_v23, %v761_v4 }
 0x225   : > { %v965_v26 = vadd.f32 %v963_v25, %v785_v24 }
 0x227   : > { %966 = vst.msk [vmem:[#allocation3] sm:$0xf] %vm2051_vm1, %v965_v26 }
 0x22a   : > { %v970_v27 = vld [vmem:[#allocation2] sm:$0xf] }
 0x22b   : > { %v971_v28 = vmul.f32 0.125, %v970_v27 }
 0x22d   : > { %v974_v31 = vmul.f32 %v971_v28, %v971_v28 }
 0x22e   : > { %v972_v29 = vld [vmem:[#allocation3] sm:$0xf] }
 0x22f   : > { %v973_v30 = vmul.f32 0.125, %v972_v29 }
 0x231   : > { %v975_v32 = vsub.f32 %v973_v30, %v974_v31 }
 0x233   : > { %v977_v33 = vadd.f32 1e-05, %v975_v32 }
 0x235   : > { %1750 = vrsqrt.f32 %v977_v33 }
 0x23f   : > { %v1751_v43 = vpop.eup %1750 }
 0x240   : > { %v979_v44 = vmul.f32 %v1751_v43, %v976_v42 }
 0x242   : > { %980 = vst.msk [vmem:[#allocation2] sm:$0xf] %vm2051_vm1, %v979_v44  ;;  %v982_v46 = vmul.f32 %v979_v44, %v971_v28 }
 0x244   : > { %v983_v47 = vsub.f32 %v981_v45, %v982_v46 }
 0x246   : > { %984 = vst.msk [vmem:[#allocation3] sm:$0xf] %vm2051_vm1, %v983_v47 }
 0x247 PF: > { %p1550_p3 = scmp.ne.s32.totalorder %s1866_s21, 1 }
 0x248   : > { %v1752_v48 = vld [vmem:[#allocation6 + $0x40] sm:$0xff] (!%p1550_p3)   ;;  %v1756_v53 = vld [vmem:[#allocation6 + $0x48] sm:$0xff] (!%p1550_p3)   ;;  %v1760_v50 = vld [vmem:[#allocation6 + $0x50] sm:$0xff] (!%p1550_p3)   ;;  %v991_v4 = vlaneseq (!%p1550_p3) }
 0x249   : > { %988 = sbr.rel (%p1550_p3) target bundleno = 851 (0x353), region = 68  ;;  %v1753_v49 = vld [vmem:[#allocation6 + $0xc0] sm:$0xff] (!%p1550_p3)   ;;  %1588 = vmatprep.subr.bf16.mxu0 (!%p1550_p3), %v1752_v48  ;;  %v1757_v54 = vld [vmem:[#allocation6 + $0xc8] sm:$0xff] (!%p1550_p3)   ;;  %v1761_v57 = vld [vmem:[#allocation6 + $0xd0] sm:$0xff] (!%p1550_p3)  }
 0x24a   : > { %v1754_v51 = vld [vmem:[#allocation6] sm:$0xff] (!%p1550_p3)   ;;  %1610 = vmatprep.subr.bf16.mxu1 (!%p1550_p3), %v1753_v49  ;;  %v1758_v55 = vld [vmem:[#allocation6 + $0x8] sm:$0xff] (!%p1550_p3)   ;;  %v1762_v58 = vld [vmem:[#allocation6 + $0x10] sm:$0xff] (!%p1550_p3)   ;;  %v992_v9 = vshrl.u32 (!%p1550_p3), %v991_v4, 7 }
 0x24b   : > { %v1755_v52 = vld [vmem:[#allocation6 + $0x80] sm:$0xff] (!%p1550_p3)   ;;  %1589 = vmatpush3.bf16.msra.mxu0 (!%p1550_p3), %v1754_v51  ;;  %v1759_v56 = vld [vmem:[#allocation6 + $0x88] sm:$0xff] (!%p1550_p3)   ;;  %v1763_v59 = vld [vmem:[#allocation6 + $0x90] sm:$0xff] (!%p1550_p3)  }
 0x24c   : > { %1611 = vmatpush3.bf16.msra.mxu1 (!%p1550_p3), %v1755_v52  ;;  %1590 = vmatprep.subr.bf16.mxu0 (!%p1550_p3), %v1756_v53  ;;  %v1764_v60 = vld [vmem:[#allocation6 + $0x58] sm:$0xff] (!%p1550_p3)   ;;  %v1768_v0 = vld [vmem:[#allocation6 + $0x60] sm:$0xff] (!%p1550_p3)   ;;  %v1772_v5 = vld [vmem:[#allocation6 + $0x68] sm:$0xff] (!%p1550_p3)   ;;  %v997_v14 = vsub.s32 (!%p1550_p3), 1, %v992_v9  ;;  %v1005_v16 = vsub.s32 (!%p1550_p3), 3, %v992_v9  ;;  %v993_v18 = vsub.s32 (!%p1550_p3), 0, %v992_v9 }
 0x24d   : > { %1612 = vmatprep.subr.bf16.mxu1 (!%p1550_p3), %v1757_v54  ;;  %v1765_v61 = vld [vmem:[#allocation6 + $0xd8] sm:$0xff] (!%p1550_p3)   ;;  %v1769_v1 = vld [vmem:[#allocation6 + $0xe0] sm:$0xff] (!%p1550_p3)   ;;  %v1773_v6 = vld [vmem:[#allocation6 + $0xe8] sm:$0xff] (!%p1550_p3)   ;;  %v1001_v20 = vsub.s32 (!%p1550_p3), 2, %v992_v9 }
 0x24e   : > { %v1766_v62 = vld [vmem:[#allocation6 + $0x18] sm:$0xff] (!%p1550_p3)   ;;  %v1770_v2 = vld [vmem:[#allocation6 + $0x20] sm:$0xff] (!%p1550_p3)   ;;  %v1774_v7 = vld [vmem:[#allocation6 + $0x28] sm:$0xff] (!%p1550_p3)  }
 0x24f   : > { %1591 = vmatpush3.bf16.msra.mxu0 (!%p1550_p3), %v1758_v55  ;;  %v1767_v63 = vld [vmem:[#allocation6 + $0x98] sm:$0xff] (!%p1550_p3)   ;;  %v1771_v3 = vld [vmem:[#allocation6 + $0xa0] sm:$0xff] (!%p1550_p3)   ;;  %v1775_v8 = vld [vmem:[#allocation6 + $0xa8] sm:$0xff] (!%p1550_p3)  }
 0x250   : > { %1613 = vmatpush3.bf16.msra.mxu1 %v1759_v56  ;;  %1592 = vmatprep.subr.bf16.mxu0 %v1760_v50  ;;  %v1776_v10 = vld [vmem:[#allocation6 + $0x70] sm:$0xff]   ;;  %v1780_v15 = vld [vmem:[#allocation6 + $0x78] sm:$0xff]  }
 0x251   : > { %1614 = vmatprep.subr.bf16.mxu1 %v1761_v57  ;;  %v1777_v11 = vld [vmem:[#allocation6 + $0xf0] sm:$0xff]   ;;  %v1781_v17 = vld [vmem:[#allocation6 + $0xf8] sm:$0xff]  }
 0x252   : > { %v1778_v12 = vld [vmem:[#allocation6 + $0x30] sm:$0xff]   ;;  %v1782_v19 = vld [vmem:[#allocation6 + $0x38] sm:$0xff]  }
 0x253   : > { %1593 = vmatpush3.bf16.msra.mxu0 %v1762_v58  ;;  %v1779_v13 = vld [vmem:[#allocation6 + $0xb0] sm:$0xff]   ;;  %v1783_v21 = vld [vmem:[#allocation6 + $0xb8] sm:$0xff]  }
 0x254   : > { %1615 = vmatpush3.bf16.msra.mxu1 %v1763_v59  ;;  %1594 = vmatprep.subr.bf16.mxu0 %v1764_v60  ;;  %v989_v22 = vld [vmem:[#allocation2] sm:$0xf]  ;;  %v1019_v23 = vld [vmem:[#allocation3] sm:$0xf] }
 0x255   : > { %1616 = vmatprep.subr.bf16.mxu1 %v1765_v61  ;;  %v998_v24 = vrot.slane %v989_v22, %v997_v14  ;;  %v1028_v25 = vrot.slane %v1019_v23, %v997_v14  ;;  %v1006_v26 = vrot.slane %v989_v22, %v1005_v16  ;;  %v1036_v27 = vrot.slane %v1019_v23, %v1005_v16 }
 0x256   : > { %v994_v28 = vrot.slane %v989_v22, %v993_v18  ;;  %v1024_v29 = vrot.slane %v1019_v23, %v993_v18  ;;  %v1002_v30 = vrot.slane %v989_v22, %v1001_v20  ;;  %v1032_v31 = vrot.slane %v1019_v23, %v1001_v20 }
 0x257   : > { %1595 = vmatpush3.bf16.msra.mxu0 %v1766_v62  ;;  %v1012_v32 = vmul.f32 %v998_v24, %v2024_v36  ;;  %v1016_v33 = vmul.f32 %v998_v24, %v2032_v40  ;;  %v1014_v42 = vmul.f32 %v1006_v26, %v2026_v37  ;;  %v1018_v43 = vmul.f32 %v1006_v26, %v2034_v41  ;;  %v1551_v62 = vld [vmem:[%s2119_s5] ss:$0 sm:$0xff] }
 0x258   : > { %1617 = vmatpush3.bf16.msra.mxu1 %v1767_v63  ;;  %1596 = vmatprep.subr.bf16.mxu0 %v1768_v0  ;;  %v1011_v44 = vmul.f32 %v994_v28, %v2020_v34  ;;  %v1015_v45 = vmul.f32 %v994_v28, %v2028_v38  ;;  %v1013_v46 = vmul.f32 %v1002_v30, %v2022_v35 }
 0x259   : > { %1618 = vmatprep.subr.bf16.mxu1 %v1769_v1  ;;  %v1017_v47 = vmul.f32 %v1002_v30, %v2030_v39  ;;  %v1042_v48 = vadd.f32 %v1028_v25, %v1012_v32  ;;  %v1046_v49 = vadd.f32 %v1028_v25, %v1016_v33  ;;  %v1044_v51 = vadd.f32 %v1036_v27, %v1014_v42 }
 0x25a   : > { %v1048_v52 = vadd.f32 %v1036_v27, %v1018_v43  ;;  %v1041_v53 = vadd.f32 %v1024_v29, %v1011_v44  ;;  %v1045_v36 = vadd.f32 %v1024_v29, %v1015_v45  ;;  %v1043_v54 = vadd.f32 %v1032_v31, %v1013_v46 }
 0x25b   : > { %1597 = vmatpush3.bf16.msra.mxu0 %v1770_v2  ;;  %v1047_v40 = vadd.f32 %v1032_v31, %v1017_v47  ;;  %v1050_v55 = vmax.f32 %v1042_v48, 0.0  ;;  %v1054_v37 = vmax.f32 %v1046_v49, 0.0  ;;  %v1052_v56 = vmax.f32 %v1044_v51, 0.0 }
 0x25c   : > { %1619 = vmatpush3.bf16.msra.mxu1 %v1771_v3  ;;  %1598 = vmatprep.subr.bf16.mxu0 %v1772_v5  ;;  %v1056_v41 = vmax.f32 %v1048_v52, 0.0  ;;  %v1049_v50 = vmax.f32 %v1041_v53, 0.0  ;;  %v1053_v34 = vmax.f32 %v1045_v36, 0.0  ;;  %v1051_v57 = vmax.f32 %v1043_v54, 0.0 }
 0x25d   : > { %1620 = vmatprep.subr.bf16.mxu1 %v1773_v6  ;;  %v1055_v38 = vmax.f32 %v1047_v40, 0.0  ;;  %v1058_v58 = vpack.c.bf16 %v1054_v37, %v1050_v55 }
 0x25e   : > { %v1060_v35 = vpack.c.bf16 %v1056_v41, %v1052_v56  ;;  %v1057_v59 = vpack.c.bf16 %v1053_v34, %v1049_v50 }
 0x25f   : > { %1599 = vmatpush3.bf16.msra.mxu0 %v1774_v7  ;;  %v1059_v39 = vpack.c.bf16 %v1055_v38, %v1051_v57  ;;  %1356 = vmatprep.mubr.bf16.mxu0 %v1058_v58 }
 0x260   : > { %1621 = vmatpush3.bf16.msra.mxu1 %v1775_v8  ;;  %1600 = vmatprep.subr.bf16.mxu0 %v1776_v10 }
 0x261   : > { %1622 = vmatprep.subr.bf16.mxu1 %v1777_v11  ;;  %1397 = vmatprep.mubr.bf16.mxu1 %v1060_v35 }
 0x263   : > { %1601 = vmatpush3.bf16.msra.mxu0 %v1778_v12 }
 0x264   : > { %1623 = vmatpush3.bf16.msra.mxu1 %v1779_v13  ;;  %1602 = vmatprep.subr.bf16.mxu0 %v1780_v15 }
 0x265   : > { %1624 = vmatprep.subr.bf16.mxu1 %v1781_v17 }
 0x267   : > { %1603 = vmatpush3.bf16.msra.mxu0 %v1782_v19 }
 0x268   : > { %1625 = vmatpush3.bf16.msra.mxu1 %v1783_v21 }
 0x26a   : > { %1357 = vmatmul.mubr.bf16.vlgmr.msra.gmra.mrb[0].mxu0 %v1057_v59 }
 0x26b   : > { %1398 = vmatmul.mubr.bf16.vlgmr.msra.gmra.mrb[0].mxu1 %v1059_v39 }
 0x33d   : > { %v1604_v60 = vpop.f32.mrb[0].mxu0 }
 0x33e   : > { %v1626_v61 = vpop.f32.mrb[0].mxu1  ;;  %v1605_v63 = vpop.f32.mrb[1].mxu0 }
 0x33f   : > { %v1627_v0 = vpop.f32.mrb[1].mxu1  ;;  %v1606_v1 = vadd.f32 %v1605_v63, %v1604_v60  ;;  %v1607_v3 = vpop.f32.mrb[2].mxu0 }
 0x340   : > { %v1628_v2 = vadd.f32 %v1627_v0, %v1626_v61  ;;  %v1629_v4 = vpop.f32.mrb[2].mxu1  ;;  %v1608_v5 = vpop.f32.mrb[3].mxu0 }
 0x341   : > { %v1630_v6 = vpop.f32.mrb[3].mxu1  ;;  %v1359_v7 = vadd.f32 %v1606_v1, %v1551_v62  ;;  %v1609_v8 = vadd.f32 %v1608_v5, %v1607_v3 }
 0x342   : > { %v1631_v9 = vadd.f32 %v1630_v6, %v1629_v4 }
 0x343   : > { %v1400_v10 = vadd.f32 %v1628_v2, %v1359_v7  ;;  %v1362_v11 = vadd.f32 %v1609_v8, %v1551_v62 }
 0x345   : > { %1784 = vtanh.f32 %v1400_v10  ;;  %v1403_v12 = vadd.f32 %v1631_v9, %v1362_v11 }
 0x347   : > { %1786 = vtanh.f32 %v1403_v12 }
 0x34f   : > { %v1785_v13 = vpop.eup %1784 }
 0x350   : > { %1408 = vst [vmem:[%s2120_s6] sm:$0xff] %v1785_v13 }
 0x351   : > { %v1787_v14 = vpop.eup %1786 }
 0x352   : > { %1409 = vst [vmem:[%s2120_s6 + $0x8] sm:$0xff] %v1787_v14 }
 0x353 PF: > { %s18_s23 = sadd.s32 1, %s1874_s23   ;;  %s2131_s21 = smov %s1870_s22 }
 0x354   : > { %p15_p4 = scmp.ge.s32.totalorder %s18_s23, 4   ;;  %s2132_s22 = smov %s2134_s25 }
 0x356   :  { %17 = sbr.rel (!%p15_p4) target bundleno = 3 (0x3), region = 99 }
 0x35d   :  { %1435 = vsyncpa [#allocation5], 1 }
 0x35e   :  { %1437 = vsyncpa [#allocation5 + $0x1], 1 }
 0x35f   :  { %1438 = vsyncpa [#allocation7], 1 }

</bundles_post_ra>
